<compile_context>
chip_gen: v7x
topology: tpu7x:2x2x1
jax: 0.10.0
libtpu: 0.0.40
codegen_flags: <defaults>
</compile_context>

<pallas_src>
import jax
import jax.numpy as jnp
from jax.experimental import pallas as pl
from jax.experimental.pallas import tpu as pltpu


def _linear_kernel(x_ref, w_ref, b_ref, out_ref):
    # out tile (tm, N) = x(tm, D) @ w(D, N) + bias(1, N), f32 accumulation.
    acc = jnp.dot(x_ref[...], w_ref[...], preferred_element_type=jnp.float32)
    out_ref[...] = (acc + b_ref[...]).astype(out_ref.dtype)


def _pick_row_tile(batch):
    """Largest MXU-friendly row tile that divides `batch`; else whole batch."""
    if batch <= 256:
        return batch                      # single grid step
    for tm in (256, 128, 64, 32, 16, 8):  # multiples of 8 keep (8,128) tiling
        if batch % tm == 0:
            return tm
    return batch                          # fallback: one big block


def linear_classifier_avt_forward(a, v, t, w, b):
    """Pallas forward. `a` and `t` are unused, exactly as in the PyTorch module.

    v: (B, D) features with D = num_modalities * model_dimension
    w: (D, N) fc weight (transposed from PyTorch's (N, D)), b: (N,) fc bias.
    """
    # TODO(synk): self.model.encoder.v_encoder is an externally-checkpointed
    # module whose architecture is not defined in this file; treated as identity.
    del a, t
    B, D = v.shape
    N = w.shape[1]
    b2 = b.reshape(1, N)

    tm = _pick_row_tile(B)
    grid = (B // tm,)

    pred = pl.pallas_call(
        _linear_kernel,
        out_shape=jax.ShapeDtypeStruct((B, N), v.dtype),
        grid_spec=pltpu.PrefetchScalarGridSpec(
            num_scalar_prefetch=0,
            grid=grid,
            in_specs=[
                pl.BlockSpec((tm, D), lambda i: (i, 0)),  # row tile, full K
                pl.BlockSpec((D, N), lambda i: (0, 0)),   # weight resident in VMEM
                pl.BlockSpec((1, N), lambda i: (0, 0)),   # bias resident in VMEM
            ],
            out_specs=pl.BlockSpec((tm, N), lambda i: (i, 0)),
        ),
        compiler_params=pltpu.CompilerParams(
            dimension_semantics=("parallel",)),
    )(v, w, b2)

    # Constant zeros — no kernel launch needed for 4 KiB of zeros.
    similarity = jnp.zeros((32, 32), jnp.float32)
    return pred, similarity


if __name__ == "__main__":
    # Small shapes consistent with the module's construction:
    # num_modalities=3, model_dimension=128 -> fc in_features = 384
    batch = 16
    num_modalities = 3
    model_dimension = 128
    feature_dim = num_modalities * model_dimension   # 384
    num_classes = 128                                # lane-dense stand-in for 700 (pad to 768 in prod)

    key = jax.random.PRNGKey(0)
    ka, kv, kt, kw, kb = jax.random.split(key, 5)

    # Inputs (a and t are unused by forward, just like the PyTorch module).
    a = jax.random.normal(ka, (batch, feature_dim), dtype=jnp.float32)
    v = jax.random.normal(kv, (batch, feature_dim), dtype=jnp.float32)
    t = jax.random.normal(kt, (batch, feature_dim), dtype=jnp.float32)

    # Deterministic fc parameters (PyTorch Linear-style uniform init).
    bound = 1.0 / jnp.sqrt(feature_dim)
    w = jax.random.uniform(kw, (feature_dim, num_classes), jnp.float32, -bound, bound)
    b = jax.random.uniform(kb, (num_classes,), jnp.float32, -bound, bound)

    pred, similarity = linear_classifier_avt_forward(a, v, t, w, b)
    jax.block_until_ready((pred, similarity))

    # Correctness check against plain JAX reference.
    pred_ref = v @ w + b
    assert pred.shape == (batch, num_classes)
    assert similarity.shape == (32, 32)
    assert jnp.allclose(pred, pred_ref, atol=1e-4, rtol=1e-4)
    assert jnp.all(similarity == 0.0)
    print("KERNEL_OK")
</pallas_src>

<mosaic_0001>
module attributes {stable_mosaic.version = 11 : i64} {
  func.func @_linear_kernel(%arg0: i32, %arg1: memref<16x384xf32, #tpu.memory_space<vmem>>, %arg2: memref<384x128xf32, #tpu.memory_space<vmem>>, %arg3: memref<1x128xf32, #tpu.memory_space<vmem>>, %arg4: memref<16x128xf32, #tpu.memory_space<vmem>>) attributes {dimension_semantics = [#tpu.dimension_semantics<parallel>], iteration_bounds = array<i64: 1>, scalar_prefetch = 0 : i64, scratch_operands = 0 : i64, tpu.core_type = #tpu.core_type<tc>, window_params = [{transform_indices = @transform_0, window_bounds = array<i64: 16, 384>}, {pipeline_mode = #tpu.pipeline_mode<synchronous>, transform_indices = @transform_1, window_bounds = array<i64: 384, 128>}, {pipeline_mode = #tpu.pipeline_mode<synchronous>, transform_indices = @transform_2, window_bounds = array<i64: 1, 128>}, {transform_indices = @transform_3, window_bounds = array<i64: 16, 128>}]} {
    %c0 = arith.constant 0 : index
    %c0_0 = arith.constant 0 : index
    %0 = vector.load %arg1[%c0, %c0_0] : memref<16x384xf32, #tpu.memory_space<vmem>>, vector<16x384xf32>
    %c0_1 = arith.constant 0 : index
    %c0_2 = arith.constant 0 : index
    %1 = vector.load %arg2[%c0_1, %c0_2] : memref<384x128xf32, #tpu.memory_space<vmem>>, vector<384x128xf32>
    %cst = arith.constant dense<0.000000e+00> : vector<16x128xf32>
    %2 = tpu.matmul %0, %1, %cst {dimension_numbers = #tpu.dot_dimension_numbers<[1], [0], [0], [1], [0, 0, 1, 1], [], []>} : vector<16x384xf32>, vector<384x128xf32>, vector<16x128xf32> -> vector<16x128xf32>
    %c0_3 = arith.constant 0 : index
    %c0_4 = arith.constant 0 : index
    %3 = vector.load %arg3[%c0_3, %c0_4] : memref<1x128xf32, #tpu.memory_space<vmem>>, vector<1x128xf32>
    %4 = vector.broadcast %3 : vector<1x128xf32> to vector<16x128xf32>
    %5 = arith.addf %2, %4 : vector<16x128xf32>
    %c0_5 = arith.constant 0 : index
    %c0_6 = arith.constant 0 : index
    %6 = vector.load %arg4[%c0_5, %c0_6] : memref<16x128xf32, #tpu.memory_space<vmem>>, vector<16x128xf32>
    tpu.vector_store %arg4[%c0_5, %c0_6], %5 {strides = array<i32>} : memref<16x128xf32, #tpu.memory_space<vmem>>, vector<16x128xf32>,
    return
  }
  func.func @transform_0(%arg0: i32) -> (i32, i32) {
    %c0_i32 = arith.constant 0 : i32
    %c0_i32_0 = arith.constant 0 : i32
    return %arg0, %c0_i32 : i32, i32
  }
  func.func @transform_1(%arg0: i32) -> (i32, i32) {
    %c0_i32 = arith.constant 0 : i32
    %c0_i32_0 = arith.constant 0 : i32
    %c0_i32_1 = arith.constant 0 : i32
    return %c0_i32, %c0_i32_0 : i32, i32
  }
  func.func @transform_2(%arg0: i32) -> (i32, i32) {
    %c0_i32 = arith.constant 0 : i32
    %c0_i32_0 = arith.constant 0 : i32
    %c0_i32_1 = arith.constant 0 : i32
    return %c0_i32, %c0_i32_0 : i32, i32
  }
  func.func @transform_3(%arg0: i32) -> (i32, i32) {
    %c0_i32 = arith.constant 0 : i32
    %c0_i32_0 = arith.constant 0 : i32
    return %arg0, %c0_i32 : i32, i32
  }
}

</mosaic_0001>

<bundles_post_ra>
// kernel: tpu_custom_call.1
= control target key start
LH: loop header
LB: loop body
LE: loop exit
PB: predicated region body
PF: predicated region fallthrough
CT: control target
= control target key end

     0   :  { %8 = vsyncpa [#allocation3], 0  ;;  %s581_s0 = inlined_call_operand.hbm [shape: f32[16,384], index: 0, kind: input, shape index: {}]   ;;  %s582_s1 = inlined_call_operand.hbm [shape: f32[384,128], index: 1, kind: input, shape index: {}]   ;;  %s583_s2 = inlined_call_operand.vmem [shape: f32[1,128], index: 2, kind: input, shape index: {}]   ;;  %s584_s3 = inlined_call_operand.hbm [shape: f32[16,128], index: 3, kind: output, shape index: {}]  }
   0x1   :  { %9 = vsyncpa [#allocation6], 0 }
   0x2   :  { %10 = vsyncpa [#allocation4], 0  ;;  %s509_s12 = smov [#allocation2]   ;;  %s437_s16 = scalar_lea.hbm %s581_s0, 768 }
   0x3   :  { %s16_s13 = sshll.u32 %s509_s12, 4  ;;  %p438_p0 = scmp.ne.s32.totalorder %s581_s0, %s437_s16  ;;  %s17_s13 = int_to_ptr.vmem [resolvable:$true] %s16_s13 }
   0x4   :  { %p441_p1 = scmp.lt.u32.totalorder %s437_s16, %s581_s0 }
   0x6   :  { %p443_p2 = pnand %p441_p1, %p438_p0 }
   0x8   :  { %446 = shalt.err (!%p443_p2)
}
   0x9   :  { %s447_s21 = scalar_lea.vmem %s17_s13, 768  ;;  %p452_p4 = scmp.lt.s32.totalorder %s17_s13, %s17_s13 }
   0xa   :  { %p448_p3 = scmp.ne.s32.totalorder %s17_s13, %s447_s21  ;;  %p453_p5 = scmp.lt.s32.totalorder %s447_s21, %s447_s21 }
   0xc   :  { %p454_p6 = por %p453_p5, %p452_p4 }
   0xe   :  { %p455_p7 = pnand %p454_p6, %p448_p3 }
  0x10   :  { %458 = shalt.err (!%p455_p7)
}
  0x11   :  { %s510_s22 = smov 384   ;;  %s511_s23 = smov 24  }
  0x12   :  { %22 = dma.hbm_to_vmem [thread:$0]  %s581_s0, 768, %s17_s13, [#allocation3], %s510_s22, %s510_s22, %s511_s23  }
  0x13   :  { %s512_s26 = smov [#allocation5]   ;;  %s459_s30 = scalar_lea.hbm %s582_s1, 6144 }
  0x14   :  { %s28_s27 = sshll.u32 %s512_s26, 4  ;;  %p460_p8 = scmp.ne.s32.totalorder %s582_s1, %s459_s30  ;;  %s29_s27 = int_to_ptr.vmem [resolvable:$true] %s28_s27 }
  0x15   :  { %p463_p9 = scmp.lt.u32.totalorder %s459_s30, %s582_s1 }
  0x17   :  { %p465_p10 = pnand %p463_p9, %p460_p8 }
  0x19   :  { %468 = shalt.err (!%p465_p10)
}
  0x1a   :  { %s469_s8 = scalar_lea.vmem %s29_s27, 6144  ;;  %p474_p12 = scmp.lt.s32.totalorder %s29_s27, %s29_s27 }
  0x1b   :  { %p470_p11 = scmp.ne.s32.totalorder %s29_s27, %s469_s8  ;;  %p475_p13 = scmp.lt.s32.totalorder %s469_s8, %s469_s8 }
  0x1d   :  { %p476_p0 = por %p475_p13, %p474_p12 }
  0x1f   :  { %p477_p1 = pnand %p476_p0, %p470_p11 }
  0x21   :  { %480 = shalt.err (!%p477_p1)
}
  0x22   :  { %s513_s0 = smov 128   ;;  %s514_s9 = smov 8  }
  0x23   :  { %34 = dma.hbm_to_vmem [thread:$0]  %s582_s1, 6144, %s29_s27, [#allocation6], %s513_s0, %s513_s0, %s514_s9  }
  0x24   :  { %503 = dma.done.wait [#allocation3], 768  }
  0x25   :  { %504 = vsyncadd [#allocation3], 4294966528 }
  0x26   :  { %505 = dma.done.wait [#allocation6], 6144  }
  0x27   :  { %506 = vsyncadd [#allocation6], 4294961152  ;;  %v65_v0 = vld [vmem:[#allocation5 + $0x80] sm:$0xff]  ;;  %v66_v1 = vld [vmem:[#allocation5 + $0x88] sm:$0xff]  ;;  %s515_s13 = smov [#allocation7]  }
  0x28   :  { %v49_v2 = vld [vmem:[#allocation5] sm:$0xff]  ;;  %v366_v3 = vpack.c.bf16 %v66_v1, %v65_v0  ;;  %v50_v4 = vld [vmem:[#allocation5 + $0x8] sm:$0xff]  ;;  %v67_v5 = vld [vmem:[#allocation5 + $0x90] sm:$0xff]  ;;  %s261_s14 = sshll.u32 %s515_s13, 4  ;;  %s262_s14 = int_to_ptr.vmem [resolvable:$true] %s261_s14 }
  0x29   :  { %v68_v6 = vld [vmem:[#allocation5 + $0x98] sm:$0xff]  ;;  %v368_v7 = vpack.c.bf16 %v50_v4, %v49_v2  ;;  %v81_v9 = vld [vmem:[#allocation5 + $0x100] sm:$0xff]  ;;  %v82_v10 = vld [vmem:[#allocation5 + $0x108] sm:$0xff]  ;;  %s481_s15 = scalar_lea.vmem %s262_s14, 256  ;;  %p486_p3 = scmp.lt.s32.totalorder %s262_s14, %s262_s14 }
  0x2a   :  { %v370_v8 = vpack.c.bf16 %v68_v6, %v67_v5  ;;  %v51_v11 = vld [vmem:[#allocation5 + $0x10] sm:$0xff]  ;;  %367 = vmatprep.subr.bf16.mxu0 %v366_v3  ;;  %v398_v12 = vpack.c.bf16 %v82_v10, %v81_v9  ;;  %v52_v13 = vld [vmem:[#allocation5 + $0x18] sm:$0xff]  ;;  %v69_v14 = vld [vmem:[#allocation5 + $0xa0] sm:$0xff]  ;;  %p482_p2 = scmp.ne.s32.totalorder %s262_s14, %s481_s15  ;;  %p487_p4 = scmp.lt.s32.totalorder %s481_s15, %s481_s15 }
  0x2b   :  { %v70_v15 = vld [vmem:[#allocation5 + $0xa8] sm:$0xff]  ;;  %369 = vmatpush3.bf16.msra.mxu0 %v368_v7  ;;  %v372_v16 = vpack.c.bf16 %v52_v13, %v51_v11  ;;  %v83_v17 = vld [vmem:[#allocation5 + $0x110] sm:$0xff]  ;;  %v84_v18 = vld [vmem:[#allocation5 + $0x118] sm:$0xff] }
  0x2c   :  { %371 = vmatprep.subr.bf16.mxu0 %v370_v8  ;;  %399 = vmatprep.subr.bf16.mxu1 %v398_v12  ;;  %v374_v19 = vpack.c.bf16 %v70_v15, %v69_v14  ;;  %v402_v20 = vpack.c.bf16 %v84_v18, %v83_v17  ;;  %v53_v21 = vld [vmem:[#allocation5 + $0x20] sm:$0xff]  ;;  %v54_v22 = vld [vmem:[#allocation5 + $0x28] sm:$0xff]  ;;  %v71_v23 = vld [vmem:[#allocation5 + $0xb0] sm:$0xff]  ;;  %p488_p5 = por %p487_p4, %p486_p3 }
  0x2d   :  { %401 = vmatpush3.bf16.msra.mxu1 %v398_v12  ;;  %v72_v24 = vld [vmem:[#allocation5 + $0xb8] sm:$0xff]  ;;  %v85_v25 = vld [vmem:[#allocation5 + $0x120] sm:$0xff]  ;;  %v86_v26 = vld [vmem:[#allocation5 + $0x128] sm:$0xff]  ;;  %v376_v28 = vpack.c.bf16 %v54_v22, %v53_v21 }
  0x2e   :  { %403 = vmatprep.subr.bf16.mxu1 %v402_v20  ;;  %v406_v27 = vpack.c.bf16 %v86_v26, %v85_v25  ;;  %v87_v29 = vld [vmem:[#allocation5 + $0x130] sm:$0xff]  ;;  %v88_v30 = vld [vmem:[#allocation5 + $0x138] sm:$0xff]  ;;  %v378_v31 = vpack.c.bf16 %v72_v24, %v71_v23  ;;  %v73_v34 = vld [vmem:[#allocation5 + $0xc0] sm:$0xff]  ;;  %p489_p6 = pnand %p488_p5, %p482_p2 }
  0x2f   :  { %373 = vmatpush3.bf16.msra.mxu0 %v372_v16  ;;  %v55_v32 = vld [vmem:[#allocation5 + $0x30] sm:$0xff]  ;;  %v56_v33 = vld [vmem:[#allocation5 + $0x38] sm:$0xff]  ;;  %v74_v35 = vld [vmem:[#allocation5 + $0xc8] sm:$0xff]  ;;  %v410_v36 = vpack.c.bf16 %v88_v30, %v87_v29 }
  0x30   :  { %375 = vmatprep.subr.bf16.mxu0 %v374_v19  ;;  %v380_v37 = vpack.c.bf16 %v56_v33, %v55_v32  ;;  %v89_v38 = vld [vmem:[#allocation5 + $0x140] sm:$0xff]  ;;  %v90_v39 = vld [vmem:[#allocation5 + $0x148] sm:$0xff]  ;;  %v382_v40 = vpack.c.bf16 %v74_v35, %v73_v34  ;;  %v75_v43 = vld [vmem:[#allocation5 + $0xd0] sm:$0xff] }
  0x31   :  { %405 = vmatpush3.bf16.msra.mxu1 %v402_v20  ;;  %v57_v41 = vld [vmem:[#allocation5 + $0x40] sm:$0xff]  ;;  %v58_v42 = vld [vmem:[#allocation5 + $0x48] sm:$0xff]  ;;  %v76_v44 = vld [vmem:[#allocation5 + $0xd8] sm:$0xff]  ;;  %v414_v45 = vpack.c.bf16 %v90_v39, %v89_v38 }
  0x32   :  { %407 = vmatprep.subr.bf16.mxu1 %v406_v27  ;;  %v44_v46 = vld [vmem:[#allocation2 + $0x8] sm:$0xff]  ;;  %v384_v47 = vpack.c.bf16 %v58_v42, %v57_v41  ;;  %v91_v48 = vld [vmem:[#allocation5 + $0x150] sm:$0xff]  ;;  %v386_v50 = vpack.c.bf16 %v76_v44, %v75_v43  ;;  %v45_v53 = vld [vmem:[#allocation2 + $0x10] sm:$0xff] }
  0x33   :  { %377 = vmatpush3.bf16.msra.mxu0 %v376_v28  ;;  %v92_v49 = vld [vmem:[#allocation5 + $0x158] sm:$0xff]  ;;  %168 = vmatprep.mubr.f32.mxu0 %v44_v46  ;;  %v59_v51 = vld [vmem:[#allocation5 + $0x50] sm:$0xff]  ;;  %v77_v54 = vld [vmem:[#allocation5 + $0xe0] sm:$0xff] }
  0x34   :  { %379 = vmatprep.subr.bf16.mxu0 %v378_v31  ;;  %v60_v52 = vld [vmem:[#allocation5 + $0x58] sm:$0xff]  ;;  %v78_v55 = vld [vmem:[#allocation5 + $0xe8] sm:$0xff]  ;;  %363 = vmatprep.mubr.f32.mxu1 %v45_v53  ;;  %v418_v56 = vpack.c.bf16 %v92_v49, %v91_v48  ;;  %v93_v58 = vld [vmem:[#allocation5 + $0x160] sm:$0xff] }
  0x35   :  { %409 = vmatpush3.bf16.msra.mxu1 %v406_v27  ;;  %v388_v57 = vpack.c.bf16 %v60_v52, %v59_v51  ;;  %v94_v59 = vld [vmem:[#allocation5 + $0x168] sm:$0xff]  ;;  %v390_v60 = vpack.c.bf16 %v78_v55, %v77_v54  ;;  %v61_v61 = vld [vmem:[#allocation5 + $0x60] sm:$0xff]  ;;  %v79_v63 = vld [vmem:[#allocation5 + $0xf0] sm:$0xff] }
  0x36   :  { %411 = vmatprep.subr.bf16.mxu1 %v410_v36  ;;  %v62_v62 = vld [vmem:[#allocation5 + $0x68] sm:$0xff]  ;;  %v80_v0 = vld [vmem:[#allocation5 + $0xf8] sm:$0xff]  ;;  %v422_v1 = vpack.c.bf16 %v94_v59, %v93_v58  ;;  %v95_v3 = vld [vmem:[#allocation5 + $0x170] sm:$0xff] }
  0x37   :  { %381 = vmatpush3.bf16.msra.mxu0 %v380_v37  ;;  %v392_v2 = vpack.c.bf16 %v62_v62, %v61_v61  ;;  %v96_v4 = vld [vmem:[#allocation5 + $0x178] sm:$0xff]  ;;  %v394_v5 = vpack.c.bf16 %v80_v0, %v79_v63  ;;  %v63_v6 = vld [vmem:[#allocation5 + $0x70] sm:$0xff]  ;;  %v46_v13 = vld [vmem:[#allocation2 + $0x18] sm:$0xff] }
  0x38   :  { %383 = vmatprep.subr.bf16.mxu0 %v382_v40  ;;  %v64_v7 = vld [vmem:[#allocation5 + $0x78] sm:$0xff]  ;;  %v426_v8 = vpack.c.bf16 %v96_v4, %v95_v3  ;;  %v43_v10 = vld [vmem:[#allocation2] sm:$0xff] }
  0x39   :  { %413 = vmatpush3.bf16.msra.mxu1 %v410_v36  ;;  %v396_v9 = vpack.c.bf16 %v64_v7, %v63_v6  ;;  %v47_v11 = vld [vmem:[#allocation2 + $0x20] sm:$0xff]  ;;  %v48_v12 = vld [vmem:[#allocation2 + $0x28] sm:$0xff] }
  0x3a   :  { %415 = vmatprep.subr.bf16.mxu1 %v414_v45  ;;  %v274_v16 = vld [vmem:[%s583_s2] ss:$0 sm:$0xff] }
  0x3b   :  { %385 = vmatpush3.bf16.msra.mxu0 %v384_v47 }
  0x3c   :  { %387 = vmatprep.subr.bf16.mxu0 %v386_v50 }
  0x3d   :  { %417 = vmatpush3.bf16.msra.mxu1 %v414_v45 }
  0x3e   :  { %419 = vmatprep.subr.bf16.mxu1 %v418_v56 }
  0x3f   :  { %389 = vmatpush3.bf16.msra.mxu0 %v388_v57 }
  0x40   :  { %391 = vmatprep.subr.bf16.mxu0 %v390_v60 }
  0x41   :  { %421 = vmatpush3.bf16.msra.mxu1 %v418_v56 }
  0x42   :  { %423 = vmatprep.subr.bf16.mxu1 %v422_v1 }
  0x43   :  { %393 = vmatpush3.bf16.msra.mxu0 %v392_v2 }
  0x44   :  { %395 = vmatprep.subr.bf16.mxu0 %v394_v5 }
  0x45   :  { %425 = vmatpush3.bf16.msra.mxu1 %v422_v1 }
  0x46   :  { %427 = vmatprep.subr.bf16.mxu1 %v426_v8 }
  0x47   :  { %397 = vmatpush3.bf16.msra.mxu0 %v396_v9 }
  0x49   :  { %429 = vmatpush3.bf16.msra.mxu1 %v426_v8 }
  0x4a   :  { %169 = vmatmul.mubr.f32.vlgmr.msra.gmra.mrb[0].mxu0 %v43_v10 }
  0x4b   :  { %173 = vmatprep.mubr.f32.mxu0 %v47_v11 }
  0x4c   :  { %364 = vmatmul.mubr.f32.vlgmr.msra.gmra.mrb[0].mxu1 %v48_v12 }
  0x4e   :  { %174 = vmatmul.mubr.f32.gmra.mrb[2].mxu0 %v46_v13 }
 0x11d   :  { %v307_v14 = vpop.f32.mrb[0].mxu0 }
 0x11e   :  { %v308_v15 = vpop.f32.mrb[1].mxu0 }
 0x11f   :  { %v309_v17 = vadd.f32 %v308_v15, %v307_v14  ;;  %v365_v18 = vpop.f32.mrb[0].mxu1 }
 0x120   :  { %v245_v19 = vpop.f32.mrb[1].mxu1 }
 0x121   :  { %v310_v20 = vpop.f32.mrb[2].mxu0  ;;  %v171_v21 = vadd.f32 %v309_v17, %v274_v16 }
 0x122   :  { %v311_v22 = vpop.f32.mrb[3].mxu0 }
 0x123   :  { %v312_v23 = vadd.f32 %v311_v22, %v310_v20  ;;  %v246_v24 = vadd.f32 %v245_v19, %v171_v21 }
 0x125   :  { %v176_v25 = vadd.f32 %v312_v23, %v274_v16  ;;  %254 = vst [vmem:[#allocation7] sm:$0xff] %v246_v24 }
 0x127   :  { %v251_v26 = vadd.f32 %v365_v18, %v176_v25 }
 0x129   :  { %255 = vst [vmem:[#allocation7 + $0x8] sm:$0xff] %v251_v26 }
 0x12a   :  { %492 = shalt.err (!%p489_p6)
}
 0x12b   :  { %s493_s17 = scalar_lea.hbm %s584_s3, 256 }
 0x12c   :  { %p494_p7 = scmp.ne.s32.totalorder %s584_s3, %s493_s17  ;;  %p497_p8 = scmp.lt.u32.totalorder %s493_s17, %s584_s3 }
 0x12e   :  { %p499_p9 = pnand %p497_p8, %p494_p7 }
 0x130   :  { %502 = shalt.err (!%p499_p9)
}
 0x131   :  { %267 = dma.vmem_to_hbm [thread:$0]  %s262_s14, 256, %s584_s3, [#allocation4], %s513_s0, %s513_s0, %s514_s9  }
 0x132   :  { %507 = dma.done.wait [#allocation4], 256  }
 0x133   :  { %508 = vsyncadd [#allocation4], 4294967040 }
 0x134   :  { %271 = vsyncpa [#allocation3], 1 }
 0x135   :  { %272 = vsyncpa [#allocation6], 1 }
 0x136   :  { %273 = vsyncpa [#allocation4], 1 }

</bundles_post_ra>
